<compile_context>
chip_gen: v5e
topology: v5e:2x2
jax: 0.10.0
libtpu: 0.0.40
codegen_flags: <defaults>
</compile_context>

<pallas_src>
import functools
import math

import jax
import jax.numpy as jnp
from jax.experimental import pallas as pl
from jax.experimental.pallas import tpu as pltpu

HIDDEN = 64
TILE_B_HARD_CAP = 8192          # never exceed this many rows per grid step
_MiB = 1024 * 1024


def _round_up(x, m):
    return (x + m - 1) // m * m


def _cdiv(a, b):
    return -(-a // b)


def _vmem_limit_bytes():
    """Scoped-VMEM limit for the pallas_call: half of physical VMEM, capped at 64 MiB.
    -> 32 MiB on v7x (64 MiB physical per TC), 64 MiB on v5e/v6e (128 MiB physical)."""
    try:
        phys = int(pltpu.get_tpu_info().vmem_capacity_bytes)
    except Exception:
        phys = 64 * _MiB                      # conservative default (v7x per-TC)
    return min(phys // 2, 64 * _MiB)


def _epilogue_dtype():
    """bf16 bias+tanh epilogue on generations with bf16 VPU/EUP (v6e, v7x); f32 otherwise."""
    try:
        kind = jax.devices()[0].device_kind.lower()
    except Exception:
        kind = ""
    old_gen = any(tok in kind for tok in ("v2", "v3", "v4", "v5"))
    return jnp.float32 if old_gen else jnp.bfloat16


def _tile_rows_cap(obs_dim, act_dim, x_itemsize, out_itemsize, vmem_budget_bytes):
    """Max rows per batch tile that fit the VMEM budget: double-buffered x/out DMA windows
    plus a few live lane-padded intermediates (HIDDEN=64 pads to 128 lanes)."""
    lane = 128
    per_row = (2 * _round_up(obs_dim, lane) * x_itemsize        # x window, double-buffered
               + 2 * _round_up(act_dim, lane) * out_itemsize    # out window, double-buffered
               + 4 * lane * 4)                                  # live f32/bf16 intermediates
    cap = max(8, (vmem_budget_bytes // per_row) // 8 * 8)
    return min(TILE_B_HARD_CAP, cap)


def _select_tiling(batch, tile_cap):
    """Pick (num_tiles, tile_b, padded_batch) with minimal padding; for large batches force an
    even grid so both v7x TensorCores get work under dimension_semantics=("parallel",)."""
    num_tiles = _cdiv(batch, tile_cap)
    if batch >= 2048 and num_tiles % 2 == 1:
        num_tiles += 1
    tile_b = _round_up(_cdiv(batch, num_tiles), 8)
    return num_tiles, tile_b, tile_b * num_tiles


def mlp_actor_kernel(x_ref,
                     w1_ref, b1_ref,
                     w2_ref, b2_ref,
                     w3_ref, b3_ref,
                     w4_ref, b4_ref,
                     o_ref,
                     *, epilogue_dtype):
    """One batch tile: 4 bf16 MXU matmuls (f32 accumulation). Hidden bias+tanh run in
    `epilogue_dtype` (bf16 on v6e/v7x -> half the EUP pushes, no re-cast before the next dot);
    the final bias+tanh stays f32 for output precision."""
    mdt = w1_ref.dtype                 # bf16 -> native MXU operand path
    edt = epilogue_dtype

    def hidden(h, w_ref, b_ref):
        acc = jnp.dot(h.astype(mdt), w_ref[...], preferred_element_type=jnp.float32)
        return jnp.tanh(acc.astype(edt) + b_ref[...].astype(edt))

    h = hidden(x_ref[...], w1_ref, b1_ref)
    h = hidden(h, w2_ref, b2_ref)
    h = hidden(h, w3_ref, b3_ref)
    acc = jnp.dot(h.astype(mdt), w4_ref[...], preferred_element_type=jnp.float32)
    o_ref[...] = jnp.tanh(acc + b4_ref[...]).astype(o_ref.dtype)


@jax.jit
def mlp_actor_forward(x, params):
    """params = ((w1, b1), ..., (w4, b4)); wi is (in, out) bf16, bi is (1, out) f32."""
    (w1, b1), (w2, b2), (w3, b3), (w4, b4) = params
    batch, obs_dim = x.shape
    act_dim = w4.shape[1]

    vmem_limit = _vmem_limit_bytes()
    tile_cap = _tile_rows_cap(obs_dim, act_dim, x.dtype.itemsize, x.dtype.itemsize,
                              (vmem_limit * 3) // 4)
    num_tiles, tile_b, padded_batch = _select_tiling(batch, tile_cap)
    if padded_batch != batch:
        x = jnp.pad(x, ((0, padded_batch - batch), (0, 0)))

    # Weights / biases pinned to block (0,0) -> VMEM-resident across all grid steps.
    pinned = lambda a: pl.BlockSpec(a.shape, lambda i: (0, 0))

    weight_bytes = sum(int(a.size) * a.dtype.itemsize
                       for a in (w1, b1, w2, b2, w3, b3, w4, b4))
    cost = pl.CostEstimate(
        flops=2 * padded_batch * (obs_dim * HIDDEN + 2 * HIDDEN * HIDDEN + HIDDEN * act_dim),
        transcendentals=padded_batch * (3 * HIDDEN + act_dim),
        bytes_accessed=padded_batch * (obs_dim + act_dim) * x.dtype.itemsize + weight_bytes,
    )

    kernel = functools.partial(mlp_actor_kernel, epilogue_dtype=_epilogue_dtype())

    out = pl.pallas_call(
        kernel,
        out_shape=jax.ShapeDtypeStruct((padded_batch, act_dim), x.dtype),
        grid=(num_tiles,),
        in_specs=[
            pl.BlockSpec((tile_b, obs_dim), lambda i: (i, 0)),
            pinned(w1), pinned(b1),
            pinned(w2), pinned(b2),
            pinned(w3), pinned(b3),
            pinned(w4), pinned(b4),
        ],
        out_specs=pl.BlockSpec((tile_b, act_dim), lambda i: (i, 0)),
        compiler_params=pltpu.CompilerParams(
            dimension_semantics=("parallel",),   # v7x: batch tiles shard across both TCs
            vmem_limit_bytes=vmem_limit,
        ),
        cost_estimate=cost,
    )(x, w1, b1, w2, b2, w3, b3, w4, b4)

    if padded_batch != batch:
        out = out[:batch]
    return out


def init_linear_params(key, in_features, out_features,
                       w_dtype=jnp.bfloat16, b_dtype=jnp.float32):
    """Matches nn.Linear default init U(-1/sqrt(in), 1/sqrt(in)); weight pre-transposed to
    (in, out) so the kernel computes x @ W. Weight stored bf16, bias f32."""
    kw, kb = jax.random.split(key)
    bound = 1.0 / math.sqrt(in_features)
    w = jax.random.uniform(kw, (in_features, out_features), jnp.float32,
                           minval=-bound, maxval=bound).astype(w_dtype)
    b = jax.random.uniform(kb, (1, out_features), jnp.float32,
                           minval=-bound, maxval=bound).astype(b_dtype)
    return w, b


def init_mlp_actor_params(key, obs_dim, act_dim, hidden=HIDDEN):
    k1, k2, k3, k4 = jax.random.split(key, 4)
    return (
        init_linear_params(k1, obs_dim, hidden),
        init_linear_params(k2, hidden, hidden),
        init_linear_params(k3, hidden, hidden),
        init_linear_params(k4, hidden, act_dim),
    )


def reference_forward(x, params):
    """Pure-JAX f32 reference matching the PyTorch forward (weights upcast to f32)."""
    (w1, b1), (w2, b2), (w3, b3), (w4, b4) = params
    f32 = lambda a: a.astype(jnp.float32)
    h = jnp.tanh(x @ f32(w1) + f32(b1))
    h = jnp.tanh(h @ f32(w2) + f32(b2))
    h = jnp.tanh(h @ f32(w3) + f32(b3))
    return jnp.tanh(h @ f32(w4) + f32(b4))


if __name__ == "__main__":
    key = jax.random.PRNGKey(0)
    k_params, k_x1, k_x2 = jax.random.split(key, 3)

    obs_dim, act_dim = 16, 4
    params = init_mlp_actor_params(k_params, obs_dim, act_dim)

    # Small batch: single tile, no padding.
    x_small = jax.random.normal(k_x1, (8, obs_dim), jnp.float32)
    pi_small = mlp_actor_forward(x_small, params)
    jax.block_until_ready(pi_small)
    assert pi_small.shape == (8, act_dim)
    # bf16 MXU + (possibly) bf16 epilogue vs f32 reference: loosened tolerance.
    assert jnp.allclose(pi_small, reference_forward(x_small, params),
                        atol=5e-2, rtol=5e-2), "small-batch mismatch vs reference"

    # Ragged batch above the even-grid threshold: exercises multi-tile + padding path.
    x_big = jax.random.normal(k_x2, (2051, obs_dim), jnp.float32)
    pi_big = mlp_actor_forward(x_big, params)
    jax.block_until_ready(pi_big)
    assert pi_big.shape == (2051, act_dim)
    assert jnp.allclose(pi_big, reference_forward(x_big, params),
                        atol=5e-2, rtol=5e-2), "ragged-batch mismatch vs reference"

    print("KERNEL_OK")
</pallas_src>

<mosaic_0001>
module attributes {stable_mosaic.version = 11 : i64} {
  func.func @mlp_actor_kernel(%arg0: i32, %arg1: memref<8x16xf32, #tpu.memory_space<vmem>>, %arg2: memref<16x64xbf16, #tpu.memory_space<vmem>>, %arg3: memref<1x64xf32, #tpu.memory_space<vmem>>, %arg4: memref<64x64xbf16, #tpu.memory_space<vmem>>, %arg5: memref<1x64xf32, #tpu.memory_space<vmem>>, %arg6: memref<64x64xbf16, #tpu.memory_space<vmem>>, %arg7: memref<1x64xf32, #tpu.memory_space<vmem>>, %arg8: memref<64x4xbf16, #tpu.memory_space<vmem>>, %arg9: memref<1x4xf32, #tpu.memory_space<vmem>>, %arg10: memref<8x4xf32, #tpu.memory_space<vmem>>) attributes {dimension_semantics = [#tpu.dimension_semantics<parallel>], iteration_bounds = array<i64: 1>, scalar_prefetch = 0 : i64, scratch_operands = 0 : i64, tpu.core_type = #tpu.core_type<tc>, window_params = [{transform_indices = @transform_0, window_bounds = array<i64: 8, 16>}, {pipeline_mode = #tpu.pipeline_mode<synchronous>, transform_indices = @transform_1, window_bounds = array<i64: 16, 64>}, {pipeline_mode = #tpu.pipeline_mode<synchronous>, transform_indices = @transform_2, window_bounds = array<i64: 1, 64>}, {pipeline_mode = #tpu.pipeline_mode<synchronous>, transform_indices = @transform_3, window_bounds = array<i64: 64, 64>}, {pipeline_mode = #tpu.pipeline_mode<synchronous>, transform_indices = @transform_4, window_bounds = array<i64: 1, 64>}, {pipeline_mode = #tpu.pipeline_mode<synchronous>, transform_indices = @transform_5, window_bounds = array<i64: 64, 64>}, {pipeline_mode = #tpu.pipeline_mode<synchronous>, transform_indices = @transform_6, window_bounds = array<i64: 1, 64>}, {pipeline_mode = #tpu.pipeline_mode<synchronous>, transform_indices = @transform_7, window_bounds = array<i64: 64, 4>}, {pipeline_mode = #tpu.pipeline_mode<synchronous>, transform_indices = @transform_8, window_bounds = array<i64: 1, 4>}, {transform_indices = @transform_9, window_bounds = array<i64: 8, 4>}]} {
    %c0 = arith.constant 0 : index
    %c0_0 = arith.constant 0 : index
    %0 = vector.load %arg1[%c0, %c0_0] : memref<8x16xf32, #tpu.memory_space<vmem>>, vector<8x16xf32>
    %1 = arith.truncf %0 : vector<8x16xf32> to vector<8x16xbf16>
    %c0_1 = arith.constant 0 : index
    %c0_2 = arith.constant 0 : index
    %2 = vector.load %arg2[%c0_1, %c0_2] : memref<16x64xbf16, #tpu.memory_space<vmem>>, vector<16x64xbf16>
    %cst = arith.constant dense<0.000000e+00> : vector<8x64xf32>
    %3 = tpu.matmul %1, %2, %cst {dimension_numbers = #tpu.dot_dimension_numbers<[1], [0], [0], [1], [0, 0, 1, 1], [], []>} : vector<8x16xbf16>, vector<16x64xbf16>, vector<8x64xf32> -> vector<8x64xf32>
    %4 = arith.truncf %3 : vector<8x64xf32> to vector<8x64xbf16>
    %c0_3 = arith.constant 0 : index
    %c0_4 = arith.constant 0 : index
    %5 = vector.load %arg3[%c0_3, %c0_4] : memref<1x64xf32, #tpu.memory_space<vmem>>, vector<1x64xf32>
    %6 = arith.truncf %5 : vector<1x64xf32> to vector<1x64xbf16>
    %7 = vector.broadcast %6 : vector<1x64xbf16> to vector<8x64xbf16>
    %8 = arith.addf %4, %7 : vector<8x64xbf16>
    %9 = math.tanh %8 : vector<8x64xbf16>
    %c0_5 = arith.constant 0 : index
    %c0_6 = arith.constant 0 : index
    %10 = vector.load %arg4[%c0_5, %c0_6] : memref<64x64xbf16, #tpu.memory_space<vmem>>, vector<64x64xbf16>
    %cst_7 = arith.constant dense<0.000000e+00> : vector<8x64xf32>
    %11 = tpu.matmul %9, %10, %cst_7 {dimension_numbers = #tpu.dot_dimension_numbers<[1], [0], [0], [1], [0, 0, 1, 1], [], []>} : vector<8x64xbf16>, vector<64x64xbf16>, vector<8x64xf32> -> vector<8x64xf32>
    %12 = arith.truncf %11 : vector<8x64xf32> to vector<8x64xbf16>
    %c0_8 = arith.constant 0 : index
    %c0_9 = arith.constant 0 : index
    %13 = vector.load %arg5[%c0_8, %c0_9] : memref<1x64xf32, #tpu.memory_space<vmem>>, vector<1x64xf32>
    %14 = arith.truncf %13 : vector<1x64xf32> to vector<1x64xbf16>
    %15 = vector.broadcast %14 : vector<1x64xbf16> to vector<8x64xbf16>
    %16 = arith.addf %12, %15 : vector<8x64xbf16>
    %17 = math.tanh %16 : vector<8x64xbf16>
    %c0_10 = arith.constant 0 : index
    %c0_11 = arith.constant 0 : index
    %18 = vector.load %arg6[%c0_10, %c0_11] : memref<64x64xbf16, #tpu.memory_space<vmem>>, vector<64x64xbf16>
    %cst_12 = arith.constant dense<0.000000e+00> : vector<8x64xf32>
    %19 = tpu.matmul %17, %18, %cst_12 {dimension_numbers = #tpu.dot_dimension_numbers<[1], [0], [0], [1], [0, 0, 1, 1], [], []>} : vector<8x64xbf16>, vector<64x64xbf16>, vector<8x64xf32> -> vector<8x64xf32>
    %20 = arith.truncf %19 : vector<8x64xf32> to vector<8x64xbf16>
    %c0_13 = arith.constant 0 : index
    %c0_14 = arith.constant 0 : index
    %21 = vector.load %arg7[%c0_13, %c0_14] : memref<1x64xf32, #tpu.memory_space<vmem>>, vector<1x64xf32>
    %22 = arith.truncf %21 : vector<1x64xf32> to vector<1x64xbf16>
    %23 = vector.broadcast %22 : vector<1x64xbf16> to vector<8x64xbf16>
    %24 = arith.addf %20, %23 : vector<8x64xbf16>
    %25 = math.tanh %24 : vector<8x64xbf16>
    %c0_15 = arith.constant 0 : index
    %c0_16 = arith.constant 0 : index
    %26 = vector.load %arg8[%c0_15, %c0_16] : memref<64x4xbf16, #tpu.memory_space<vmem>>, vector<64x4xbf16>
    %cst_17 = arith.constant dense<0.000000e+00> : vector<8x4xf32>
    %27 = tpu.matmul %25, %26, %cst_17 {dimension_numbers = #tpu.dot_dimension_numbers<[1], [0], [0], [1], [0, 0, 1, 1], [], []>} : vector<8x64xbf16>, vector<64x4xbf16>, vector<8x4xf32> -> vector<8x4xf32>
    %c0_18 = arith.constant 0 : index
    %c0_19 = arith.constant 0 : index
    %28 = vector.load %arg9[%c0_18, %c0_19] : memref<1x4xf32, #tpu.memory_space<vmem>>, vector<1x4xf32>
    %29 = vector.broadcast %28 : vector<1x4xf32> to vector<8x4xf32>
    %30 = arith.addf %27, %29 : vector<8x4xf32>
    %31 = math.tanh %30 : vector<8x4xf32>
    %c0_20 = arith.constant 0 : index
    %c0_21 = arith.constant 0 : index
    %32 = vector.load %arg10[%c0_20, %c0_21] : memref<8x4xf32, #tpu.memory_space<vmem>>, vector<8x4xf32>
    tpu.vector_store %arg10[%c0_20, %c0_21], %31 {strides = array<i32>} : memref<8x4xf32, #tpu.memory_space<vmem>>, vector<8x4xf32>,
    return
  }
  func.func @transform_0(%arg0: i32) -> (i32, i32) {
    %c0_i32 = arith.constant 0 : i32
    %c0_i32_0 = arith.constant 0 : i32
    return %arg0, %c0_i32 : i32, i32
  }
  func.func @transform_1(%arg0: i32) -> (i32, i32) {
    %c0_i32 = arith.constant 0 : i32
    %c0_i32_0 = arith.constant 0 : i32
    %c0_i32_1 = arith.constant 0 : i32
    return %c0_i32, %c0_i32_0 : i32, i32
  }
  func.func @transform_2(%arg0: i32) -> (i32, i32) {
    %c0_i32 = arith.constant 0 : i32
    %c0_i32_0 = arith.constant 0 : i32
    %c0_i32_1 = arith.constant 0 : i32
    return %c0_i32, %c0_i32_0 : i32, i32
  }
  func.func @transform_3(%arg0: i32) -> (i32, i32) {
    %c0_i32 = arith.constant 0 : i32
    %c0_i32_0 = arith.constant 0 : i32
    %c0_i32_1 = arith.constant 0 : i32
    return %c0_i32, %c0_i32_0 : i32, i32
  }
  func.func @transform_4(%arg0: i32) -> (i32, i32) {
    %c0_i32 = arith.constant 0 : i32
    %c0_i32_0 = arith.constant 0 : i32
    %c0_i32_1 = arith.constant 0 : i32
    return %c0_i32, %c0_i32_0 : i32, i32
  }
  func.func @transform_5(%arg0: i32) -> (i32, i32) {
    %c0_i32 = arith.constant 0 : i32
    %c0_i32_0 = arith.constant 0 : i32
    %c0_i32_1 = arith.constant 0 : i32
    return %c0_i32, %c0_i32_0 : i32, i32
  }
  func.func @transform_6(%arg0: i32) -> (i32, i32) {
    %c0_i32 = arith.constant 0 : i32
    %c0_i32_0 = arith.constant 0 : i32
    %c0_i32_1 = arith.constant 0 : i32
    return %c0_i32, %c0_i32_0 : i32, i32
  }
  func.func @transform_7(%arg0: i32) -> (i32, i32) {
    %c0_i32 = arith.constant 0 : i32
    %c0_i32_0 = arith.constant 0 : i32
    %c0_i32_1 = arith.constant 0 : i32
    return %c0_i32, %c0_i32_0 : i32, i32
  }
  func.func @transform_8(%arg0: i32) -> (i32, i32) {
    %c0_i32 = arith.constant 0 : i32
    %c0_i32_0 = arith.constant 0 : i32
    %c0_i32_1 = arith.constant 0 : i32
    return %c0_i32, %c0_i32_0 : i32, i32
  }
  func.func @transform_9(%arg0: i32) -> (i32, i32) {
    %c0_i32 = arith.constant 0 : i32
    %c0_i32_0 = arith.constant 0 : i32
    return %arg0, %c0_i32 : i32, i32
  }
}

</mosaic_0001>

<bundles_post_ra>
// kernel: mlp_actor_forward.1
= control target key start
LH: loop header
LB: loop body
LE: loop exit
PB: predicated region body
PF: predicated region fallthrough
CT: control target
= control target key end

     0   :  { %14 = vsyncpa [#allocation3], 0  ;;  %s570_s0 = inlined_call_operand.hbm [shape: f32[8,16], index: 0, kind: input, shape index: {}]   ;;  %s571_s1 = inlined_call_operand.hbm [shape: bf16[16,64], index: 1, kind: input, shape index: {}]   ;;  %s572_s2 = inlined_call_operand.vmem [shape: f32[1,64], index: 2, kind: input, shape index: {}]   ;;  %s573_s3 = inlined_call_operand.vmem [shape: bf16[64,64], index: 3, kind: input, shape index: {}]   ;;  %s574_s4 = inlined_call_operand.vmem [shape: f32[1,64], index: 4, kind: input, shape index: {}]   ;;  %s575_s5 = inlined_call_operand.hbm [shape: bf16[64,64], index: 5, kind: input, shape index: {}]   ;;  %s576_s6 = inlined_call_operand.vmem [shape: f32[1,64], index: 6, kind: input, shape index: {}]   ;;  %s577_s7 = inlined_call_operand.vmem [shape: bf16[64,4], index: 7, kind: input, shape index: {}]   ;;  %s578_s8 = inlined_call_operand.vmem [shape: f32[1,4], index: 8, kind: input, shape index: {}]   ;;  %s579_s9 = inlined_call_operand.vmem [shape: f32[8,4], index: 9, kind: output, shape index: {}]  }
   0x1   :  { %15 = vsyncpa [#allocation5], 0  ;;  %s31_s11 = sshll.u32 %s571_s1, 4  ;;  %s464_s12 = smov [#allocation4]   ;;  %s32_s11 = int_to_ptr.hbm [resolvable:$true] %s31_s11 }
   0x2   :  { %s33_s13 = sshll.u32 %s464_s12, 4  ;;  %s21_s16 = sshll.u32 %s570_s0, 4  ;;  %s34_s13 = int_to_ptr.vmem [resolvable:$true] %s33_s13  ;;  %s22_s16 = int_to_ptr.hbm [resolvable:$true] %s21_s16 }
   0x3   :  { %s465_s17 = smov 64   ;;  %s466_s18 = smov 4  }
   0x4   :  { %39 = dma.hbm_to_vmem [thread:$0]  %s32_s11, 128, %s34_s13, [#allocation5], %s465_s17, %s465_s17, %s466_s18  }
   0x5   :  { %s467_s19 = smov [#allocation2]   ;;  %s50_s23 = sshll.u32 %s575_s5, 4  ;;  %s51_s23 = int_to_ptr.hbm [resolvable:$true] %s50_s23 }
   0x6   :  { %s23_s20 = sshll.u32 %s467_s19, 4  ;;  %s468_s1 = smov [#allocation6]   ;;  %s24_s20 = int_to_ptr.vmem [resolvable:$true] %s23_s20 }
   0x7   :  { %26 = dma.hbm_to_vmem [thread:$0]  %s22_s16, 128, %s24_s20, [#allocation3]  }
   0x8   :  { %s52_s24 = sshll.u32 %s468_s1, 4  ;;  %s53_s24 = int_to_ptr.vmem [resolvable:$true] %s52_s24 }
   0x9   :  { %58 = dma.hbm_to_vmem [thread:$0]  %s51_s23, 512, %s53_s24, [#allocation5], %s465_s17, %s465_s17, %s466_s18  }
   0xa   :  { %460 = dma.done.wait [#allocation3], 128  }
   0xb   :  { %461 = vsyncadd [#allocation3], 4294967168 }
   0xc   :  { %462 = dma.done.wait [#allocation5], 640  }
   0xd   :  { %463 = vsyncadd [#allocation5], 4294966656  ;;  %v361_v0 = vld [vmem:[#allocation4] sm:$0xff]  ;;  %v78_v1 = vld [vmem:[#allocation2] sm:$0xff]  ;;  %vm88_vm0 = vcmask 130048   ;;  %vm151_vm1 = vcmask 523264  }
   0xe   :  { %v79_v2 = vpack.c.bf16 %v78_v1, %v78_v1  ;;  %99 = vmatpush.bf16.msra.mxu0 %v361_v0  ;;  %v365_v3 = vld [vmem:[%s573_s3 + $0x18] sm:$0xff]  ;;  %v364_v4 = vld [vmem:[%s573_s3 + $0x10] sm:$0xff]  ;;  %v363_v5 = vld [vmem:[%s573_s3 + $0x8] sm:$0xff]  ;;  %vm297_vm2 = vcmask 31744  }
   0xf   :  { %159 = vmatpush.bf16.msra.mxu1 %v365_v3  ;;  %v362_v6 = vld [vmem:[%s573_s3] sm:$0xff]  ;;  %v369_v21 = vld [vmem:[#allocation6 + $0x18] sm:$0xff]  ;;  %v367_v23 = vld [vmem:[#allocation6 + $0x8] sm:$0xff] }
  0x10   :  { %v106_v7 = vld [vmem:[%s572_s2] sm:$0x1]  ;;  %221 = vmatpush.bf16.msra.mxu2 %v369_v21  ;;  %v366_v24 = vld [vmem:[#allocation6] sm:$0xff]  ;;  %v373_v39 = vld [vmem:[%s577_s7 + $0x18] sm:$0xff] }
  0x11   :  { %309 = vmatmul.msk.bf16.vlgmr.msra.gmra.mxu0 %vm88_vm0, %v79_v2  ;;  %v107_v8 = vpack.c.bf16 %v106_v7, %v106_v7  ;;  %v368_v22 = vld [vmem:[#allocation6 + $0x10] sm:$0xff]  ;;  %287 = vmatpush.bf16.msra.mxu3 %v373_v39  ;;  %v372_v40 = vld [vmem:[%s577_s7 + $0x10] sm:$0xff]  ;;  %v371_v41 = vld [vmem:[%s577_s7 + $0x8] sm:$0xff] }
  0x12   :  { %v169_v25 = vld [vmem:[%s574_s4] sm:$0x1] }
  0x13   :  { %160 = vmatpush.bf16.msra.mxu1 %v364_v4  ;;  %v109_v9 = vpack.i.b16 %v107_v8, %v107_v8  ;;  %v170_v26 = vpack.c.bf16 %v169_v25, %v169_v25  ;;  %v370_v42 = vld [vmem:[%s577_s7] sm:$0xff] }
  0x14   :  { %222 = vmatpush.bf16.msra.mxu2 %v368_v22  ;;  %v231_v43 = vld [vmem:[%s576_s6] sm:$0x1] }
  0x15   :  { %v111_v10 = vperm.slane %v109_v9, 0  ;;  %v172_v27 = vpack.i.b16 %v170_v26, %v170_v26  ;;  %288 = vmatpush.bf16.msra.mxu3 %v372_v40  ;;  %v232_v44 = vpack.c.bf16 %v231_v43, %v231_v43  ;;  %v379_v57 = vld [vmem:[%s578_s8] ss:$0 sm:$0xff] }
  0x17   :  { %161 = vmatpush.bf16.msra.mxu1 %v363_v5  ;;  %v113_v13 = vunpack.c.l.bf16 %v111_v10  ;;  %v174_v28 = vperm.slane %v172_v27, 0  ;;  %v234_v45 = vpack.i.b16 %v232_v44, %v232_v44 }
  0x18   :  { %223 = vmatpush.bf16.msra.mxu2 %v367_v23 }
  0x19   :  { %v176_v31 = vunpack.c.l.bf16 %v174_v28  ;;  %289 = vmatpush.bf16.msra.mxu3 %v371_v41  ;;  %v236_v46 = vperm.slane %v234_v45, 0 }
  0x1b   :  { %162 = vmatpush.bf16.msra.mxu1 %v362_v6  ;;  %v238_v49 = vunpack.c.l.bf16 %v236_v46 }
  0x1c   :  { %224 = vmatpush.bf16.msra.mxu2 %v366_v24 }
  0x1d   :  { %290 = vmatpush.bf16.msra.mxu3 %v370_v42 }
  0x8e   :  { %v101_v11 = vpop.f32.mrf.mxu0 }
  0x8f   :  { %v105_v12 = vpack.c.bf16 %v101_v11, %v101_v11 }
  0x91   :  { %v112_v14 = vunpack.c.l.bf16 %v105_v12 }
  0x93   :  { %v114_v15 = vadd.f32 %v113_v13, %v112_v14 }
  0x95   :  { %v115_v16 = vpack.c.bf16 %v114_v15, %v114_v15 }
  0x96   :  { %v103_v17 = vpop.f32.mrf.mxu0 }
  0x97   :  { %v116_v18 = vunpack.c.l.bf16 %v115_v16 }
  0x99   :  { %380 = vtanh.f32 %v116_v18 }
  0x9f   :  { %v381_v19 = vpop.eup %380 }
  0xa0   :  { %v118_v20 = vpack.c.bf16 %v381_v19, %v381_v19 }
  0xa2   :  { %326 = vmatmul.msk.bf16.vlgmr.msra.gmra.mxu1 %vm151_vm1, %v118_v20 }
 0x11f   :  { %v164_v29 = vpop.f32.mrf.mxu1 }
 0x120   :  { %v168_v30 = vpack.c.bf16 %v164_v29, %v164_v29 }
 0x122   :  { %v175_v32 = vunpack.c.l.bf16 %v168_v30 }
 0x124   :  { %v177_v33 = vadd.f32 %v176_v31, %v175_v32 }
 0x126   :  { %v178_v34 = vpack.c.bf16 %v177_v33, %v177_v33 }
 0x127   :  { %v166_v35 = vpop.f32.mrf.mxu1 }
 0x128   :  { %v179_v36 = vunpack.c.l.bf16 %v178_v34 }
 0x12a   :  { %382 = vtanh.f32 %v179_v36 }
 0x130   :  { %v383_v37 = vpop.eup %382 }
 0x131   :  { %v181_v38 = vpack.c.bf16 %v383_v37, %v383_v37 }
 0x133   :  { %343 = vmatmul.msk.bf16.vlgmr.msra.gmra.mxu2 %vm151_vm1, %v181_v38 }
 0x1b6   :  { %v226_v47 = vpop.f32.mrf.mxu2 }
 0x1b7   :  { %v230_v48 = vpack.c.bf16 %v226_v47, %v226_v47 }
 0x1b9   :  { %v237_v50 = vunpack.c.l.bf16 %v230_v48 }
 0x1bb   :  { %v239_v51 = vadd.f32 %v238_v49, %v237_v50 }
 0x1bd   :  { %v240_v52 = vpack.c.bf16 %v239_v51, %v239_v51 }
 0x1be   :  { %v228_v53 = vpop.f32.mrf.mxu2 }
 0x1bf   :  { %v241_v54 = vunpack.c.l.bf16 %v240_v52 }
 0x1c1   :  { %384 = vtanh.f32 %v241_v54 }
 0x1c7   :  { %v385_v55 = vpop.eup %384 }
 0x1c8   :  { %v243_v56 = vpack.c.bf16 %v385_v55, %v385_v55 }
 0x1ca   :  { %360 = vmatmul.msk.bf16.vlgmr.msra.gmra.mxu3 %vm151_vm1, %v243_v56 }
 0x24d   :  { %v292_v58 = vpop.f32.mrf.mxu3 }
 0x24e   :  { %v293_v59 = vadd.f32 %v379_v57, %v292_v58 }
 0x250   :  { %386 = vtanh.f32 %v293_v59 }
 0x255   :  { %v294_v60 = vpop.f32.mrf.mxu3 }
 0x256   :  { %v387_v61 = vpop.eup %386 }
 0x257   :  { %298 = vst.msk [vmem:[%s579_s9] sm:$0xff] %vm297_vm2, %v387_v61 }
 0x258   :  { %303 = vsyncpa [#allocation3], 1 }
 0x259   :  { %304 = vsyncpa [#allocation5], 1 }

</bundles_post_ra>
